<compile_context>
chip_gen: v6e
topology: v6e:2x2x1
jax: 0.10.0
libtpu: 0.0.40
codegen_flags: <defaults>
</compile_context>

<pallas_src>
import jax
import jax.numpy as jnp
from jax import lax
from jax.experimental import pallas as pl
from jax.experimental.pallas import tpu as pltpu


# ------------------------------- fused kernel ---------------------------------

def _cae_fused_kernel(zr_ref, zrt_ref, r_ref,
                      w1_ref, b1_ref, s1_ref, t1_ref,
                      w2_ref, b2_ref, s2_ref, t2_ref,
                      w3_ref, b3_ref, wf_ref, bf_ref,
                      pred_ref, sse_ref):
    Bt, N, C1 = zr_ref.shape          # Bt panels per grid step
    C = C1 - 1
    K = wf_ref.shape[1]

    zr = zr_ref[...]                                   # (Bt, N, C+1)  ==  [z | r]
    # Fold panels into the MXU M dimension (N is a multiple of 8 -> tile-aligned, free reshape).
    z2 = zr[:, :, :C].reshape(Bt * N, C)               # (Bt*N, C)

    # ---- beta MLP: Linear -> BN(eval) -> ReLU -> Linear -> BN(eval) -> ReLU -> Linear ----
    h = jnp.dot(z2, w1_ref[...], preferred_element_type=jnp.float32) + b1_ref[...]
    h = jnp.maximum(h * s1_ref[...] + t1_ref[...], 0.0)     # folded eval-mode BatchNorm1d
    # TODO(synk): dropout is eval-mode identity; training-mode RNG masks not reproduced.
    h = jnp.dot(h, w2_ref[...], preferred_element_type=jnp.float32) + b2_ref[...]
    h = jnp.maximum(h * s2_ref[...] + t2_ref[...], 0.0)
    beta = (jnp.dot(h, w3_ref[...], preferred_element_type=jnp.float32)
            + b3_ref[...]).reshape(Bt, N, K)           # (Bt, N, K)

    # ---- fused normal equations per panel: A = z^T [z | r]  (single batched MXU pass) ----
    zt = zrt_ref[...][:, :C, :]                        # (Bt, C, N)  pre-transposed in the wrapper
    A = jnp.einsum('bcn,bnd->bcd', zt, zr,
                   preferred_element_type=jnp.float32)  # (Bt, C, C+1) = [G | z^T r]

    # ---- in-kernel OLS solve: Gauss-Jordan on the SPD Gram (no pivoting needed), unrolled ----
    # torch.inverse(z^T z) @ z^T r  ==  solve(G, z^T r); Gram of a full-rank z is SPD, so the
    # diagonal pivots stay positive and no row pivoting is required.
    # TODO(synk): rank-deficient / ill-conditioned panels are as fragile as torch.inverse itself.
    row_ids = lax.broadcasted_iota(jnp.int32, (Bt, C, C + 1), 1)
    for k in range(C):                                 # static, fully unrolled (C is small)
        piv_row = A[:, k:k + 1, :] / A[:, k:k + 1, k:k + 1]      # (Bt, 1, C+1)
        elim = A - A[:, :, k:k + 1] * piv_row                    # (Bt, C, C+1)
        A = jnp.where(row_ids == k, jnp.broadcast_to(piv_row, elim.shape), elim)
    # After elimination the last column holds x = inv(z^T z) @ z^T r; pick it with a lane mask.
    lane_ids = lax.broadcasted_iota(jnp.int32, (Bt, C, C + 1), 2)
    x_sol = jnp.sum(jnp.where(lane_ids == C, A, 0.0), axis=-1)   # (Bt, C)

    # ---- factor head + prediction + per-step loss (all lane-dense) ----
    factor = jnp.dot(x_sol, wf_ref[...], preferred_element_type=jnp.float32) + bf_ref[...]  # (Bt, K)
    factor_b = lax.broadcast_in_dim(factor, (Bt, N, K), (0, 2))
    r_pred = jnp.sum(beta * factor_b, axis=-1)         # (Bt, N):  r_pred[b,n] = sum_k beta*factor
    pred_ref[...] = r_pred

    d = r_pred - r_ref[...]
    sse_ref[...] = jnp.sum(d * d, keepdims=True)       # (1, 1) total SSE of this panel tile


# ------------------------------ Python wrapper ---------------------------------

def _choose_b_tile(B, N, C, h1, h2, K, vmem_budget_bytes=8 << 20):
    """Panels per grid step. Budget kept well under the scoped VMEM default (32 MiB) so the same
    tiling is safe on v7x (64 MiB physical VMEM) as well as v5e/v6e (128 MiB)."""
    per_panel = 4 * (2 * N * (C + 1)          # [z|r] slab + its transpose
                     + 2 * N                  # r_true + r_pred
                     + N * (h1 + h2 + K)      # MLP intermediates + beta
                     + 2 * C * (C + 1))       # gram / solve temporaries
    cap = max(1, int(vmem_budget_bytes // (2 * per_panel)))   # x2: double-buffered pipeline
    if B <= cap:
        return B
    best = None
    for d in range(8, cap + 1, 8):            # multiples of 8 keep 2-D block shapes (8,128)-legal
        if B % d == 0:
            best = d
    return best if best is not None else B    # per-panel data is tiny; whole batch still fits


def conditional_autoencoder_forward(xs, y_trues, params, *, b_tile=None):
    """xs: [B, N, C] float32, y_trues: [B, N] float32."""
    xs = xs.astype(jnp.float32)
    r = y_trues.astype(jnp.float32)
    B, N, C = xs.shape
    h1 = params["w1"].shape[1]
    h2 = params["w2"].shape[1]
    K = params["w3"].shape[1]

    # [z | r] slab and its transpose: free layout plumbing in the wrapper so the kernel can do
    # z^T [z | r] as one lane-dense batched matmul with the canonical contraction pattern.
    zr = jnp.concatenate([xs, r[:, :, None]], axis=-1)      # (B, N, C+1)
    zrt = jnp.transpose(zr, (0, 2, 1))                      # (B, C+1, N)

    if b_tile is None:
        b_tile = _choose_b_tile(B, N, C, h1, h2, K)
    assert B % b_tile == 0, "b_tile must divide B"
    g = B // b_tile

    param_list = [params[k] for k in ("w1", "b1", "bn1_scale", "bn1_shift",
                                      "w2", "b2", "bn2_scale", "bn2_shift",
                                      "w3", "b3", "wf", "bf")]

    pred, sse = pl.pallas_call(
        _cae_fused_kernel,
        out_shape=(
            jax.ShapeDtypeStruct((B, N), jnp.float32),      # stacked r_pred, lane-dense
            jax.ShapeDtypeStruct((g, 1, 1), jnp.float32),   # per-grid-step SSE
        ),
        grid=(g,),
        in_specs=[
            pl.BlockSpec((b_tile, N, C + 1), lambda i: (i, 0, 0)),
            pl.BlockSpec((b_tile, C + 1, N), lambda i: (i, 0, 0)),
            pl.BlockSpec((b_tile, N), lambda i: (i, 0)),
        ] + [pl.BlockSpec(p.shape, lambda i: (0, 0)) for p in param_list],
        out_specs=(
            pl.BlockSpec((b_tile, N), lambda i: (i, 0)),
            pl.BlockSpec((None, 1, 1), lambda i: (i, 0, 0)),
        ),
        compiler_params=pltpu.CompilerParams(
            dimension_semantics=("parallel",),   # panel-tile axis: shards across v7x's 2 TCs
        ),
    )(zr, zrt, r, *param_list)

    # loss = (1/B) * sum_b mean_n(d^2); all panels share N, so it equals total SSE / (B*N).
    loss = jnp.sum(sse) / float(B * N)
    # Stacked predictions (B, N, 1) instead of a per-panel Python list (avoids per-panel dispatch).
    return {"loss": loss, "y_preds": pred[..., None]}


# ------------------------------ Parameter init ---------------------------------

def _linear_init(key, fan_in, fan_out):
    kw, kb = jax.random.split(key)
    bound = 1.0 / float(fan_in) ** 0.5
    w = jax.random.uniform(kw, (fan_in, fan_out), jnp.float32, -bound, bound)  # stored as (in, out)
    b = jax.random.uniform(kb, (1, fan_out), jnp.float32, -bound, bound)
    return w, b


def _bn_eval_params(key, dim, eps=1e-5):
    k1, k2, k3, k4 = jax.random.split(key, 4)
    gamma = 1.0 + 0.1 * jax.random.normal(k1, (1, dim), jnp.float32)
    beta = 0.1 * jax.random.normal(k2, (1, dim), jnp.float32)
    mean = 0.1 * jax.random.normal(k3, (1, dim), jnp.float32)
    var = jax.random.uniform(k4, (1, dim), jnp.float32, 0.5, 1.5)
    scale = gamma / jnp.sqrt(var + eps)
    shift = beta - mean * scale
    return scale, shift


def init_params(key, in_channels, hidden_channels):
    # beta MLP: hidden layers = hidden_channels[:-1], output dim = hidden_channels[-1]
    h1, h2, k_out = hidden_channels
    keys = jax.random.split(key, 6)
    w1, b1 = _linear_init(keys[0], in_channels, h1)
    s1, t1 = _bn_eval_params(keys[1], h1)
    w2, b2 = _linear_init(keys[2], h1, h2)
    s2, t2 = _bn_eval_params(keys[3], h2)
    w3, b3 = _linear_init(keys[4], h2, k_out)
    wf, bf = _linear_init(keys[5], in_channels, k_out)      # self.factor: Linear(in_channels, K)
    return dict(w1=w1, b1=b1, bn1_scale=s1, bn1_shift=t1,
                w2=w2, b2=b2, bn2_scale=s2, bn2_shift=t2,
                w3=w3, b3=b3, wf=wf, bf=bf)


# ----------------------------------- Main ---------------------------------------

if __name__ == "__main__":
    B, N, C = 2, 16, 8                       # 2 panels, 16 samples each, in_channels=8
    hidden_channels = [32, 16, 4]            # MLP hidden = [32, 16], factor dim K = 4

    key = jax.random.PRNGKey(0)
    kp, kx, ky = jax.random.split(key, 3)
    params = init_params(kp, C, hidden_channels)
    xs = jax.random.normal(kx, (B, N, C), jnp.float32)
    y_trues = jax.random.normal(ky, (B, N), jnp.float32)

    fwd = jax.jit(conditional_autoencoder_forward)
    out = fwd(xs, y_trues, params)
    jax.block_until_ready(out["loss"])
    jax.block_until_ready(out["y_preds"])

    print("KERNEL_OK")
</pallas_src>

<mosaic_0001>
module attributes {stable_mosaic.version = 11 : i64} {
  func.func @_cae_fused_kernel(%arg0: i32, %arg1: memref<2x16x9xf32, #tpu.memory_space<vmem>>, %arg2: memref<2x9x16xf32, #tpu.memory_space<vmem>>, %arg3: memref<2x16xf32, #tpu.memory_space<vmem>>, %arg4: memref<8x32xf32, #tpu.memory_space<vmem>>, %arg5: memref<1x32xf32, #tpu.memory_space<vmem>>, %arg6: memref<1x32xf32, #tpu.memory_space<vmem>>, %arg7: memref<1x32xf32, #tpu.memory_space<vmem>>, %arg8: memref<32x16xf32, #tpu.memory_space<vmem>>, %arg9: memref<1x16xf32, #tpu.memory_space<vmem>>, %arg10: memref<1x16xf32, #tpu.memory_space<vmem>>, %arg11: memref<1x16xf32, #tpu.memory_space<vmem>>, %arg12: memref<16x4xf32, #tpu.memory_space<vmem>>, %arg13: memref<1x4xf32, #tpu.memory_space<vmem>>, %arg14: memref<8x4xf32, #tpu.memory_space<vmem>>, %arg15: memref<1x4xf32, #tpu.memory_space<vmem>>, %arg16: memref<2x16xf32, #tpu.memory_space<vmem>>, %arg17: memref<1x1x1xf32, #tpu.memory_space<vmem>>) attributes {dimension_semantics = [#tpu.dimension_semantics<parallel>], iteration_bounds = array<i64: 1>, scalar_prefetch = 0 : i64, scratch_operands = 0 : i64, tpu.core_type = #tpu.core_type<tc>, window_params = [{transform_indices = @transform_0, window_bounds = array<i64: 2, 16, 9>}, {transform_indices = @transform_1, window_bounds = array<i64: 2, 9, 16>}, {transform_indices = @transform_2, window_bounds = array<i64: 2, 16>}, {pipeline_mode = #tpu.pipeline_mode<synchronous>, transform_indices = @transform_3, window_bounds = array<i64: 8, 32>}, {pipeline_mode = #tpu.pipeline_mode<synchronous>, transform_indices = @transform_4, window_bounds = array<i64: 1, 32>}, {pipeline_mode = #tpu.pipeline_mode<synchronous>, transform_indices = @transform_5, window_bounds = array<i64: 1, 32>}, {pipeline_mode = #tpu.pipeline_mode<synchronous>, transform_indices = @transform_6, window_bounds = array<i64: 1, 32>}, {pipeline_mode = #tpu.pipeline_mode<synchronous>, transform_indices = @transform_7, window_bounds = array<i64: 32, 16>}, {pipeline_mode = #tpu.pipeline_mode<synchronous>, transform_indices = @transform_8, window_bounds = array<i64: 1, 16>}, {pipeline_mode = #tpu.pipeline_mode<synchronous>, transform_indices = @transform_9, window_bounds = array<i64: 1, 16>}, {pipeline_mode = #tpu.pipeline_mode<synchronous>, transform_indices = @transform_10, window_bounds = array<i64: 1, 16>}, {pipeline_mode = #tpu.pipeline_mode<synchronous>, transform_indices = @transform_11, window_bounds = array<i64: 16, 4>}, {pipeline_mode = #tpu.pipeline_mode<synchronous>, transform_indices = @transform_12, window_bounds = array<i64: 1, 4>}, {pipeline_mode = #tpu.pipeline_mode<synchronous>, transform_indices = @transform_13, window_bounds = array<i64: 8, 4>}, {pipeline_mode = #tpu.pipeline_mode<synchronous>, transform_indices = @transform_14, window_bounds = array<i64: 1, 4>}, {transform_indices = @transform_15, window_bounds = array<i64: 2, 16>}, {transform_indices = @transform_16, window_bounds = array<i64: 1, 1, 1>}]} {
    %c0 = arith.constant 0 : index
    %c0_0 = arith.constant 0 : index
    %c0_1 = arith.constant 0 : index
    %0 = vector.load %arg1[%c0, %c0_0, %c0_1] : memref<2x16x9xf32, #tpu.memory_space<vmem>>, vector<2x16x9xf32>
    %1 = vector.extract_strided_slice %0 {offsets = [0, 0, 0], sizes = [2, 16, 8], strides = [1, 1, 1]} : vector<2x16x9xf32> to vector<2x16x8xf32>
    %2 = vector.shape_cast %1 : vector<2x16x8xf32> to vector<32x8xf32>
    %c0_2 = arith.constant 0 : index
    %c0_3 = arith.constant 0 : index
    %3 = vector.load %arg4[%c0_2, %c0_3] : memref<8x32xf32, #tpu.memory_space<vmem>>, vector<8x32xf32>
    %cst = arith.constant dense<0.000000e+00> : vector<32x32xf32>
    %4 = tpu.matmul %2, %3, %cst {dimension_numbers = #tpu.dot_dimension_numbers<[1], [0], [0], [1], [0, 0, 1, 1], [], []>} : vector<32x8xf32>, vector<8x32xf32>, vector<32x32xf32> -> vector<32x32xf32>
    %c0_4 = arith.constant 0 : index
    %c0_5 = arith.constant 0 : index
    %5 = vector.load %arg5[%c0_4, %c0_5] : memref<1x32xf32, #tpu.memory_space<vmem>>, vector<1x32xf32>
    %6 = vector.broadcast %5 : vector<1x32xf32> to vector<32x32xf32>
    %7 = arith.addf %4, %6 : vector<32x32xf32>
    %c0_6 = arith.constant 0 : index
    %c0_7 = arith.constant 0 : index
    %8 = vector.load %arg6[%c0_6, %c0_7] : memref<1x32xf32, #tpu.memory_space<vmem>>, vector<1x32xf32>
    %9 = vector.broadcast %8 : vector<1x32xf32> to vector<32x32xf32>
    %10 = arith.mulf %7, %9 : vector<32x32xf32>
    %c0_8 = arith.constant 0 : index
    %c0_9 = arith.constant 0 : index
    %11 = vector.load %arg7[%c0_8, %c0_9] : memref<1x32xf32, #tpu.memory_space<vmem>>, vector<1x32xf32>
    %12 = vector.broadcast %11 : vector<1x32xf32> to vector<32x32xf32>
    %13 = arith.addf %10, %12 : vector<32x32xf32>
    %cst_10 = arith.constant 0.000000e+00 : f32
    %14 = vector.broadcast %cst_10 : f32 to vector<32x32xf32>
    %15 = arith.maximumf %13, %14 : vector<32x32xf32>
    %c0_11 = arith.constant 0 : index
    %c0_12 = arith.constant 0 : index
    %16 = vector.load %arg8[%c0_11, %c0_12] : memref<32x16xf32, #tpu.memory_space<vmem>>, vector<32x16xf32>
    %cst_13 = arith.constant dense<0.000000e+00> : vector<32x16xf32>
    %17 = tpu.matmul %15, %16, %cst_13 {dimension_numbers = #tpu.dot_dimension_numbers<[1], [0], [0], [1], [0, 0, 1, 1], [], []>} : vector<32x32xf32>, vector<32x16xf32>, vector<32x16xf32> -> vector<32x16xf32>
    %c0_14 = arith.constant 0 : index
    %c0_15 = arith.constant 0 : index
    %18 = vector.load %arg9[%c0_14, %c0_15] : memref<1x16xf32, #tpu.memory_space<vmem>>, vector<1x16xf32>
    %19 = vector.broadcast %18 : vector<1x16xf32> to vector<32x16xf32>
    %20 = arith.addf %17, %19 : vector<32x16xf32>
    %c0_16 = arith.constant 0 : index
    %c0_17 = arith.constant 0 : index
    %21 = vector.load %arg10[%c0_16, %c0_17] : memref<1x16xf32, #tpu.memory_space<vmem>>, vector<1x16xf32>
    %22 = vector.broadcast %21 : vector<1x16xf32> to vector<32x16xf32>
    %23 = arith.mulf %20, %22 : vector<32x16xf32>
    %c0_18 = arith.constant 0 : index
    %c0_19 = arith.constant 0 : index
    %24 = vector.load %arg11[%c0_18, %c0_19] : memref<1x16xf32, #tpu.memory_space<vmem>>, vector<1x16xf32>
    %25 = vector.broadcast %24 : vector<1x16xf32> to vector<32x16xf32>
    %26 = arith.addf %23, %25 : vector<32x16xf32>
    %cst_20 = arith.constant 0.000000e+00 : f32
    %27 = vector.broadcast %cst_20 : f32 to vector<32x16xf32>
    %28 = arith.maximumf %26, %27 : vector<32x16xf32>
    %c0_21 = arith.constant 0 : index
    %c0_22 = arith.constant 0 : index
    %29 = vector.load %arg12[%c0_21, %c0_22] : memref<16x4xf32, #tpu.memory_space<vmem>>, vector<16x4xf32>
    %cst_23 = arith.constant dense<0.000000e+00> : vector<32x4xf32>
    %30 = tpu.matmul %28, %29, %cst_23 {dimension_numbers = #tpu.dot_dimension_numbers<[1], [0], [0], [1], [0, 0, 1, 1], [], []>} : vector<32x16xf32>, vector<16x4xf32>, vector<32x4xf32> -> vector<32x4xf32>
    %c0_24 = arith.constant 0 : index
    %c0_25 = arith.constant 0 : index
    %31 = vector.load %arg13[%c0_24, %c0_25] : memref<1x4xf32, #tpu.memory_space<vmem>>, vector<1x4xf32>
    %32 = vector.broadcast %31 : vector<1x4xf32> to vector<32x4xf32>
    %33 = arith.addf %30, %32 : vector<32x4xf32>
    %34 = vector.shape_cast %33 : vector<32x4xf32> to vector<2x16x4xf32>
    %c0_26 = arith.constant 0 : index
    %c0_27 = arith.constant 0 : index
    %c0_28 = arith.constant 0 : index
    %35 = vector.load %arg2[%c0_26, %c0_27, %c0_28] : memref<2x9x16xf32, #tpu.memory_space<vmem>>, vector<2x9x16xf32>
    %36 = vector.extract_strided_slice %35 {offsets = [0, 0, 0], sizes = [2, 8, 16], strides = [1, 1, 1]} : vector<2x9x16xf32> to vector<2x8x16xf32>
    "tpu.trace_start"() <{level = 10 : i32, message = "bcn,bnd->bcd"}> : () -> ()
    %cst_29 = arith.constant dense<0.000000e+00> : vector<2x8x9xf32>
    %37 = tpu.matmul %36, %0, %cst_29 {dimension_numbers = #tpu.dot_dimension_numbers<[2], [1], [1], [2], [0, 0, 0, 1, 1, 2], [0], [0]>} : vector<2x8x16xf32>, vector<2x16x9xf32>, vector<2x8x9xf32> -> vector<2x8x9xf32>
    "tpu.trace_stop"() : () -> ()
    %38 = tpu.iota {dimensions = array<i32: 1>} : vector<2x8x9xi32>
    %39 = vector.extract_strided_slice %37 {offsets = [0, 0, 0], sizes = [2, 1, 9], strides = [1, 1, 1]} : vector<2x8x9xf32> to vector<2x1x9xf32>
    %40 = vector.extract_strided_slice %37 {offsets = [0, 0, 0], sizes = [2, 1, 1], strides = [1, 1, 1]} : vector<2x8x9xf32> to vector<2x1x1xf32>
    %41 = vector.broadcast %40 : vector<2x1x1xf32> to vector<2x1x9xf32>
    %42 = arith.divf %39, %41 : vector<2x1x9xf32>
    %43 = vector.extract_strided_slice %37 {offsets = [0, 0, 0], sizes = [2, 8, 1], strides = [1, 1, 1]} : vector<2x8x9xf32> to vector<2x8x1xf32>
    %44 = vector.broadcast %43 : vector<2x8x1xf32> to vector<2x8x9xf32>
    %45 = vector.broadcast %42 : vector<2x1x9xf32> to vector<2x8x9xf32>
    %46 = arith.mulf %44, %45 : vector<2x8x9xf32>
    %47 = arith.subf %37, %46 : vector<2x8x9xf32>
    %c0_i32 = arith.constant 0 : i32
    %48 = vector.broadcast %c0_i32 : i32 to vector<2x8x9xi32>
    %49 = arith.cmpi eq, %38, %48 : vector<2x8x9xi32>
    %50 = vector.shape_cast %42 : vector<2x1x9xf32> to vector<2x1x9xf32>
    %51 = vector.broadcast %50 : vector<2x1x9xf32> to vector<2x8x9xf32>
    %52 = arith.select %49, %51, %47 : vector<2x8x9xi1>, vector<2x8x9xf32>
    %53 = vector.extract_strided_slice %52 {offsets = [0, 1, 0], sizes = [2, 1, 9], strides = [1, 1, 1]} : vector<2x8x9xf32> to vector<2x1x9xf32>
    %54 = vector.extract_strided_slice %52 {offsets = [0, 1, 1], sizes = [2, 1, 1], strides = [1, 1, 1]} : vector<2x8x9xf32> to vector<2x1x1xf32>
    %55 = vector.broadcast %54 : vector<2x1x1xf32> to vector<2x1x9xf32>
    %56 = arith.divf %53, %55 : vector<2x1x9xf32>
    %57 = vector.extract_strided_slice %52 {offsets = [0, 0, 1], sizes = [2, 8, 1], strides = [1, 1, 1]} : vector<2x8x9xf32> to vector<2x8x1xf32>
    %58 = vector.broadcast %57 : vector<2x8x1xf32> to vector<2x8x9xf32>
    %59 = vector.broadcast %56 : vector<2x1x9xf32> to vector<2x8x9xf32>
    %60 = arith.mulf %58, %59 : vector<2x8x9xf32>
    %61 = arith.subf %52, %60 : vector<2x8x9xf32>
    %c1_i32 = arith.constant 1 : i32
    %62 = vector.broadcast %c1_i32 : i32 to vector<2x8x9xi32>
    %63 = arith.cmpi eq, %38, %62 : vector<2x8x9xi32>
    %64 = vector.shape_cast %56 : vector<2x1x9xf32> to vector<2x1x9xf32>
    %65 = vector.broadcast %64 : vector<2x1x9xf32> to vector<2x8x9xf32>
    %66 = arith.select %63, %65, %61 : vector<2x8x9xi1>, vector<2x8x9xf32>
    %67 = vector.extract_strided_slice %66 {offsets = [0, 2, 0], sizes = [2, 1, 9], strides = [1, 1, 1]} : vector<2x8x9xf32> to vector<2x1x9xf32>
    %68 = vector.extract_strided_slice %66 {offsets = [0, 2, 2], sizes = [2, 1, 1], strides = [1, 1, 1]} : vector<2x8x9xf32> to vector<2x1x1xf32>
    %69 = vector.broadcast %68 : vector<2x1x1xf32> to vector<2x1x9xf32>
    %70 = arith.divf %67, %69 : vector<2x1x9xf32>
    %71 = vector.extract_strided_slice %66 {offsets = [0, 0, 2], sizes = [2, 8, 1], strides = [1, 1, 1]} : vector<2x8x9xf32> to vector<2x8x1xf32>
    %72 = vector.broadcast %71 : vector<2x8x1xf32> to vector<2x8x9xf32>
    %73 = vector.broadcast %70 : vector<2x1x9xf32> to vector<2x8x9xf32>
    %74 = arith.mulf %72, %73 : vector<2x8x9xf32>
    %75 = arith.subf %66, %74 : vector<2x8x9xf32>
    %c2_i32 = arith.constant 2 : i32
    %76 = vector.broadcast %c2_i32 : i32 to vector<2x8x9xi32>
    %77 = arith.cmpi eq, %38, %76 : vector<2x8x9xi32>
    %78 = vector.shape_cast %70 : vector<2x1x9xf32> to vector<2x1x9xf32>
    %79 = vector.broadcast %78 : vector<2x1x9xf32> to vector<2x8x9xf32>
    %80 = arith.select %77, %79, %75 : vector<2x8x9xi1>, vector<2x8x9xf32>
    %81 = vector.extract_strided_slice %80 {offsets = [0, 3, 0], sizes = [2, 1, 9], strides = [1, 1, 1]} : vector<2x8x9xf32> to vector<2x1x9xf32>
    %82 = vector.extract_strided_slice %80 {offsets = [0, 3, 3], sizes = [2, 1, 1], strides = [1, 1, 1]} : vector<2x8x9xf32> to vector<2x1x1xf32>
    %83 = vector.broadcast %82 : vector<2x1x1xf32> to vector<2x1x9xf32>
    %84 = arith.divf %81, %83 : vector<2x1x9xf32>
    %85 = vector.extract_strided_slice %80 {offsets = [0, 0, 3], sizes = [2, 8, 1], strides = [1, 1, 1]} : vector<2x8x9xf32> to vector<2x8x1xf32>
    %86 = vector.broadcast %85 : vector<2x8x1xf32> to vector<2x8x9xf32>
    %87 = vector.broadcast %84 : vector<2x1x9xf32> to vector<2x8x9xf32>
    %88 = arith.mulf %86, %87 : vector<2x8x9xf32>
    %89 = arith.subf %80, %88 : vector<2x8x9xf32>
    %c3_i32 = arith.constant 3 : i32
    %90 = vector.broadcast %c3_i32 : i32 to vector<2x8x9xi32>
    %91 = arith.cmpi eq, %38, %90 : vector<2x8x9xi32>
    %92 = vector.shape_cast %84 : vector<2x1x9xf32> to vector<2x1x9xf32>
    %93 = vector.broadcast %92 : vector<2x1x9xf32> to vector<2x8x9xf32>
    %94 = arith.select %91, %93, %89 : vector<2x8x9xi1>, vector<2x8x9xf32>
    %95 = vector.extract_strided_slice %94 {offsets = [0, 4, 0], sizes = [2, 1, 9], strides = [1, 1, 1]} : vector<2x8x9xf32> to vector<2x1x9xf32>
    %96 = vector.extract_strided_slice %94 {offsets = [0, 4, 4], sizes = [2, 1, 1], strides = [1, 1, 1]} : vector<2x8x9xf32> to vector<2x1x1xf32>
    %97 = vector.broadcast %96 : vector<2x1x1xf32> to vector<2x1x9xf32>
    %98 = arith.divf %95, %97 : vector<2x1x9xf32>
    %99 = vector.extract_strided_slice %94 {offsets = [0, 0, 4], sizes = [2, 8, 1], strides = [1, 1, 1]} : vector<2x8x9xf32> to vector<2x8x1xf32>
    %100 = vector.broadcast %99 : vector<2x8x1xf32> to vector<2x8x9xf32>
    %101 = vector.broadcast %98 : vector<2x1x9xf32> to vector<2x8x9xf32>
    %102 = arith.mulf %100, %101 : vector<2x8x9xf32>
    %103 = arith.subf %94, %102 : vector<2x8x9xf32>
    %c4_i32 = arith.constant 4 : i32
    %104 = vector.broadcast %c4_i32 : i32 to vector<2x8x9xi32>
    %105 = arith.cmpi eq, %38, %104 : vector<2x8x9xi32>
    %106 = vector.shape_cast %98 : vector<2x1x9xf32> to vector<2x1x9xf32>
    %107 = vector.broadcast %106 : vector<2x1x9xf32> to vector<2x8x9xf32>
    %108 = arith.select %105, %107, %103 : vector<2x8x9xi1>, vector<2x8x9xf32>
    %109 = vector.extract_strided_slice %108 {offsets = [0, 5, 0], sizes = [2, 1, 9], strides = [1, 1, 1]} : vector<2x8x9xf32> to vector<2x1x9xf32>
    %110 = vector.extract_strided_slice %108 {offsets = [0, 5, 5], sizes = [2, 1, 1], strides = [1, 1, 1]} : vector<2x8x9xf32> to vector<2x1x1xf32>
    %111 = vector.broadcast %110 : vector<2x1x1xf32> to vector<2x1x9xf32>
    %112 = arith.divf %109, %111 : vector<2x1x9xf32>
    %113 = vector.extract_strided_slice %108 {offsets = [0, 0, 5], sizes = [2, 8, 1], strides = [1, 1, 1]} : vector<2x8x9xf32> to vector<2x8x1xf32>
    %114 = vector.broadcast %113 : vector<2x8x1xf32> to vector<2x8x9xf32>
    %115 = vector.broadcast %112 : vector<2x1x9xf32> to vector<2x8x9xf32>
    %116 = arith.mulf %114, %115 : vector<2x8x9xf32>
    %117 = arith.subf %108, %116 : vector<2x8x9xf32>
    %c5_i32 = arith.constant 5 : i32
    %118 = vector.broadcast %c5_i32 : i32 to vector<2x8x9xi32>
    %119 = arith.cmpi eq, %38, %118 : vector<2x8x9xi32>
    %120 = vector.shape_cast %112 : vector<2x1x9xf32> to vector<2x1x9xf32>
    %121 = vector.broadcast %120 : vector<2x1x9xf32> to vector<2x8x9xf32>
    %122 = arith.select %119, %121, %117 : vector<2x8x9xi1>, vector<2x8x9xf32>
    %123 = vector.extract_strided_slice %122 {offsets = [0, 6, 0], sizes = [2, 1, 9], strides = [1, 1, 1]} : vector<2x8x9xf32> to vector<2x1x9xf32>
    %124 = vector.extract_strided_slice %122 {offsets = [0, 6, 6], sizes = [2, 1, 1], strides = [1, 1, 1]} : vector<2x8x9xf32> to vector<2x1x1xf32>
    %125 = vector.broadcast %124 : vector<2x1x1xf32> to vector<2x1x9xf32>
    %126 = arith.divf %123, %125 : vector<2x1x9xf32>
    %127 = vector.extract_strided_slice %122 {offsets = [0, 0, 6], sizes = [2, 8, 1], strides = [1, 1, 1]} : vector<2x8x9xf32> to vector<2x8x1xf32>
    %128 = vector.broadcast %127 : vector<2x8x1xf32> to vector<2x8x9xf32>
    %129 = vector.broadcast %126 : vector<2x1x9xf32> to vector<2x8x9xf32>
    %130 = arith.mulf %128, %129 : vector<2x8x9xf32>
    %131 = arith.subf %122, %130 : vector<2x8x9xf32>
    %c6_i32 = arith.constant 6 : i32
    %132 = vector.broadcast %c6_i32 : i32 to vector<2x8x9xi32>
    %133 = arith.cmpi eq, %38, %132 : vector<2x8x9xi32>
    %134 = vector.shape_cast %126 : vector<2x1x9xf32> to vector<2x1x9xf32>
    %135 = vector.broadcast %134 : vector<2x1x9xf32> to vector<2x8x9xf32>
    %136 = arith.select %133, %135, %131 : vector<2x8x9xi1>, vector<2x8x9xf32>
    %137 = vector.extract_strided_slice %136 {offsets = [0, 7, 0], sizes = [2, 1, 9], strides = [1, 1, 1]} : vector<2x8x9xf32> to vector<2x1x9xf32>
    %138 = vector.extract_strided_slice %136 {offsets = [0, 7, 7], sizes = [2, 1, 1], strides = [1, 1, 1]} : vector<2x8x9xf32> to vector<2x1x1xf32>
    %139 = vector.broadcast %138 : vector<2x1x1xf32> to vector<2x1x9xf32>
    %140 = arith.divf %137, %139 : vector<2x1x9xf32>
    %141 = vector.extract_strided_slice %136 {offsets = [0, 0, 7], sizes = [2, 8, 1], strides = [1, 1, 1]} : vector<2x8x9xf32> to vector<2x8x1xf32>
    %142 = vector.broadcast %141 : vector<2x8x1xf32> to vector<2x8x9xf32>
    %143 = vector.broadcast %140 : vector<2x1x9xf32> to vector<2x8x9xf32>
    %144 = arith.mulf %142, %143 : vector<2x8x9xf32>
    %145 = arith.subf %136, %144 : vector<2x8x9xf32>
    %c7_i32 = arith.constant 7 : i32
    %146 = vector.broadcast %c7_i32 : i32 to vector<2x8x9xi32>
    %147 = arith.cmpi eq, %38, %146 : vector<2x8x9xi32>
    %148 = vector.shape_cast %140 : vector<2x1x9xf32> to vector<2x1x9xf32>
    %149 = vector.broadcast %148 : vector<2x1x9xf32> to vector<2x8x9xf32>
    %150 = arith.select %147, %149, %145 : vector<2x8x9xi1>, vector<2x8x9xf32>
    %151 = tpu.iota {dimensions = array<i32: 2>} : vector<2x8x9xi32>
    %c8_i32 = arith.constant 8 : i32
    %152 = vector.broadcast %c8_i32 : i32 to vector<2x8x9xi32>
    %153 = arith.cmpi eq, %151, %152 : vector<2x8x9xi32>
    %cst_30 = arith.constant 0.000000e+00 : f32
    %154 = vector.broadcast %cst_30 : f32 to vector<2x8x9xf32>
    %155 = arith.select %153, %150, %154 : vector<2x8x9xi1>, vector<2x8x9xf32>
    %cst_31 = arith.constant dense<0.000000e+00> : vector<2x8xf32>
    %156 = vector.multi_reduction <add>, %155, %cst_31 [2] : vector<2x8x9xf32> to vector<2x8xf32>
    %c0_32 = arith.constant 0 : index
    %c0_33 = arith.constant 0 : index
    %157 = vector.load %arg14[%c0_32, %c0_33] : memref<8x4xf32, #tpu.memory_space<vmem>>, vector<8x4xf32>
    %cst_34 = arith.constant dense<0.000000e+00> : vector<2x4xf32>
    %158 = tpu.matmul %156, %157, %cst_34 {dimension_numbers = #tpu.dot_dimension_numbers<[1], [0], [0], [1], [0, 0, 1, 1], [], []>} : vector<2x8xf32>, vector<8x4xf32>, vector<2x4xf32> -> vector<2x4xf32>
    %c0_35 = arith.constant 0 : index
    %c0_36 = arith.constant 0 : index
    %159 = vector.load %arg15[%c0_35, %c0_36] : memref<1x4xf32, #tpu.memory_space<vmem>>, vector<1x4xf32>
    %160 = vector.broadcast %159 : vector<1x4xf32> to vector<2x4xf32>
    %161 = arith.addf %158, %160 : vector<2x4xf32>
    %162 = vector.shape_cast %161 : vector<2x4xf32> to vector<2x1x4xf32>
    %163 = vector.broadcast %162 : vector<2x1x4xf32> to vector<2x16x4xf32>
    %164 = arith.mulf %34, %163 : vector<2x16x4xf32>
    %cst_37 = arith.constant dense<0.000000e+00> : vector<2x16xf32>
    %165 = vector.multi_reduction <add>, %164, %cst_37 [2] : vector<2x16x4xf32> to vector<2x16xf32>
    %c0_38 = arith.constant 0 : index
    %c0_39 = arith.constant 0 : index
    %166 = vector.load %arg16[%c0_38, %c0_39] : memref<2x16xf32, #tpu.memory_space<vmem>>, vector<2x16xf32>
    tpu.vector_store %arg16[%c0_38, %c0_39], %165 {strides = array<i32>} : memref<2x16xf32, #tpu.memory_space<vmem>>, vector<2x16xf32>,
    %c0_40 = arith.constant 0 : index
    %c0_41 = arith.constant 0 : index
    %167 = vector.load %arg3[%c0_40, %c0_41] : memref<2x16xf32, #tpu.memory_space<vmem>>, vector<2x16xf32>
    %168 = arith.subf %165, %167 : vector<2x16xf32>
    %169 = arith.mulf %168, %168 : vector<2x16xf32>
    %170 = vector.shape_cast %169 : vector<2x16xf32> to vector<1x2x16xf32>
    %cst_42 = arith.constant dense<0.000000e+00> : vector<1xf32>
    %171 = vector.multi_reduction <add>, %170, %cst_42 [1, 2] : vector<1x2x16xf32> to vector<1xf32>
    %172 = vector.shape_cast %171 : vector<1xf32> to vector<1x1x1xf32>
    %173 = vector.extract %172[0, 0, 0] : f32 from vector<1x1x1xf32>
    %174 = vector.broadcast %173 : f32 to vector<1x1xf32>
    %c0_43 = arith.constant 0 : index
    %c0_44 = arith.constant 0 : index
    %c0_45 = arith.constant 0 : index
    %175 = vector.load %arg17[%c0_43, %c0_44, %c0_45] : memref<1x1x1xf32, #tpu.memory_space<vmem>>, vector<1x1x1xf32>
    %176 = vector.shape_cast %175 : vector<1x1x1xf32> to vector<1x1xf32>
    %177 = vector.shape_cast %174 : vector<1x1xf32> to vector<1x1x1xf32>
    tpu.vector_store %arg17[%c0_43, %c0_44, %c0_45], %177 {strides = array<i32>} : memref<1x1x1xf32, #tpu.memory_space<vmem>>, vector<1x1x1xf32>,
    return
  }
  func.func @transform_0(%arg0: i32) -> (i32, i32, i32) {
    %c0_i32 = arith.constant 0 : i32
    %c0_i32_0 = arith.constant 0 : i32
    %c0_i32_1 = arith.constant 0 : i32
    return %arg0, %c0_i32, %c0_i32_0 : i32, i32, i32
  }
  func.func @transform_1(%arg0: i32) -> (i32, i32, i32) {
    %c0_i32 = arith.constant 0 : i32
    %c0_i32_0 = arith.constant 0 : i32
    %c0_i32_1 = arith.constant 0 : i32
    return %arg0, %c0_i32, %c0_i32_0 : i32, i32, i32
  }
  func.func @transform_2(%arg0: i32) -> (i32, i32) {
    %c0_i32 = arith.constant 0 : i32
    %c0_i32_0 = arith.constant 0 : i32
    return %arg0, %c0_i32 : i32, i32
  }
  func.func @transform_3(%arg0: i32) -> (i32, i32) {
    %c0_i32 = arith.constant 0 : i32
    %c0_i32_0 = arith.constant 0 : i32
    %c0_i32_1 = arith.constant 0 : i32
    return %c0_i32, %c0_i32_0 : i32, i32
  }
  func.func @transform_4(%arg0: i32) -> (i32, i32) {
    %c0_i32 = arith.constant 0 : i32
    %c0_i32_0 = arith.constant 0 : i32
    %c0_i32_1 = arith.constant 0 : i32
    return %c0_i32, %c0_i32_0 : i32, i32
  }
  func.func @transform_5(%arg0: i32) -> (i32, i32) {
    %c0_i32 = arith.constant 0 : i32
    %c0_i32_0 = arith.constant 0 : i32
    %c0_i32_1 = arith.constant 0 : i32
    return %c0_i32, %c0_i32_0 : i32, i32
  }
  func.func @transform_6(%arg0: i32) -> (i32, i32) {
    %c0_i32 = arith.constant 0 : i32
    %c0_i32_0 = arith.constant 0 : i32
    %c0_i32_1 = arith.constant 0 : i32
    return %c0_i32, %c0_i32_0 : i32, i32
  }
  func.func @transform_7(%arg0: i32) -> (i32, i32) {
    %c0_i32 = arith.constant 0 : i32
    %c0_i32_0 = arith.constant 0 : i32
    %c0_i32_1 = arith.constant 0 : i32
    return %c0_i32, %c0_i32_0 : i32, i32
  }
  func.func @transform_8(%arg0: i32) -> (i32, i32) {
    %c0_i32 = arith.constant 0 : i32
    %c0_i32_0 = arith.constant 0 : i32
    %c0_i32_1 = arith.constant 0 : i32
    return %c0_i32, %c0_i32_0 : i32, i32
  }
  func.func @transform_9(%arg0: i32) -> (i32, i32) {
    %c0_i32 = arith.constant 0 : i32
    %c0_i32_0 = arith.constant 0 : i32
    %c0_i32_1 = arith.constant 0 : i32
    return %c0_i32, %c0_i32_0 : i32, i32
  }
  func.func @transform_10(%arg0: i32) -> (i32, i32) {
    %c0_i32 = arith.constant 0 : i32
    %c0_i32_0 = arith.constant 0 : i32
    %c0_i32_1 = arith.constant 0 : i32
    return %c0_i32, %c0_i32_0 : i32, i32
  }
  func.func @transform_11(%arg0: i32) -> (i32, i32) {
    %c0_i32 = arith.constant 0 : i32
    %c0_i32_0 = arith.constant 0 : i32
    %c0_i32_1 = arith.constant 0 : i32
    return %c0_i32, %c0_i32_0 : i32, i32
  }
  func.func @transform_12(%arg0: i32) -> (i32, i32) {
    %c0_i32 = arith.constant 0 : i32
    %c0_i32_0 = arith.constant 0 : i32
    %c0_i32_1 = arith.constant 0 : i32
    return %c0_i32, %c0_i32_0 : i32, i32
  }
  func.func @transform_13(%arg0: i32) -> (i32, i32) {
    %c0_i32 = arith.constant 0 : i32
    %c0_i32_0 = arith.constant 0 : i32
    %c0_i32_1 = arith.constant 0 : i32
    return %c0_i32, %c0_i32_0 : i32, i32
  }
  func.func @transform_14(%arg0: i32) -> (i32, i32) {
    %c0_i32 = arith.constant 0 : i32
    %c0_i32_0 = arith.constant 0 : i32
    %c0_i32_1 = arith.constant 0 : i32
    return %c0_i32, %c0_i32_0 : i32, i32
  }
  func.func @transform_15(%arg0: i32) -> (i32, i32) {
    %c0_i32 = arith.constant 0 : i32
    %c0_i32_0 = arith.constant 0 : i32
    return %arg0, %c0_i32 : i32, i32
  }
  func.func @transform_16(%arg0: i32) -> (i32, i32, i32) {
    %c0_i32 = arith.constant 0 : i32
    %c0_i32_0 = arith.constant 0 : i32
    %c0_i32_1 = arith.constant 0 : i32
    return %arg0, %c0_i32, %c0_i32_0 : i32, i32, i32
  }
}

</mosaic_0001>

<bundles_post_ra>
// kernel: conditional_autoencoder_forward.1
= control target key start
LH: loop header
LB: loop body
LE: loop exit
PB: predicated region body
PF: predicated region fallthrough
CT: control target
= control target key end

     0   :  { %s1628_s0 = inlined_call_operand.vmem [shape: f32[2,16,9], index: 0, kind: input, shape index: {}]   ;;  %s1629_s1 = inlined_call_operand.vmem [shape: f32[2,9,16], index: 1, kind: input, shape index: {}]   ;;  %s1630_s2 = inlined_call_operand.vmem [shape: f32[2,16], index: 2, kind: input, shape index: {}]   ;;  %s1631_s3 = inlined_call_operand.vmem [shape: f32[8,32], index: 3, kind: input, shape index: {}]   ;;  %s1632_s4 = inlined_call_operand.vmem [shape: f32[1,32], index: 4, kind: input, shape index: {}]   ;;  %s1633_s5 = inlined_call_operand.vmem [shape: f32[1,32], index: 5, kind: input, shape index: {}]   ;;  %s1634_s6 = inlined_call_operand.vmem [shape: f32[1,32], index: 6, kind: input, shape index: {}]   ;;  %s1635_s7 = inlined_call_operand.vmem [shape: f32[32,16], index: 7, kind: input, shape index: {}]   ;;  %s1636_s8 = inlined_call_operand.vmem [shape: f32[1,16], index: 8, kind: input, shape index: {}]   ;;  %s1637_s9 = inlined_call_operand.vmem [shape: f32[1,16], index: 9, kind: input, shape index: {}]   ;;  %s1638_s10 = inlined_call_operand.vmem [shape: f32[1,16], index: 10, kind: input, shape index: {}]   ;;  %s1639_s11 = inlined_call_operand.vmem [shape: f32[16,4], index: 11, kind: input, shape index: {}]   ;;  %s1640_s12 = inlined_call_operand.vmem [shape: f32[1,4], index: 12, kind: input, shape index: {}]   ;;  %s1641_s13 = inlined_call_operand.vmem [shape: f32[8,4], index: 13, kind: input, shape index: {}]   ;;  %s1642_s14 = inlined_call_operand.vmem [shape: f32[1,4], index: 14, kind: input, shape index: {}]   ;;  %s1643_s15 = inlined_call_operand.hbm [shape: f32[2,16], index: 15, kind: output, shape index: {0}]   ;;  %s1644_s16 = inlined_call_operand.hbm [shape: f32[1,1,1], index: 16, kind: output, shape index: {1}]  }
   0x1   :  { %1646 = sst [smem:[#allocation8_spill]] %s1628_s0 }
   0x2   :  { %22 = vsyncpa [#allocation3], 0  ;;  %v58_v0 = vld [vmem:[%s1631_s3] sm:$0xff]  ;;  %s1647_s25 = sld [smem:[#allocation8_spill]]  ;;  %vm66_vm0 = vcmask 64512  }
   0x3   :  { %1159 = vmatprep.subr.mxu0 %v58_v0 }
   0x8   :  { %v54_v1 = vld [vmem:[%s1647_s25] sm:$0xff]  ;;  %v55_v2 = vld [vmem:[%s1647_s25 + $0x8] sm:$0xff]  ;;  %v1426_v3 = vld [vmem:[%s1647_s25 + $0x10] sm:$0xff] }
   0x9   :  { %1161 = vmatprep.mubr.msk.f32.mxu0 %vm66_vm0, %v54_v1 }
   0xa   :  { %23 = vsyncpa [#allocation5], 0  ;;  %1160 = vmatpush3.msra.mxu0 %v58_v0  ;;  %v1434_v4 = vld [vmem:[%s1647_s25 + $0x18] sm:$0xff]  ;;  %v192_v6 = vld [vmem:[%s1635_s7 + $0x10] sm:$0xff]  ;;  %v1315_v9 = vmov 0.0   ;;  %vm201_vm1 = vcmask 261120  }
   0xb   :  { %1162 = vmatmul.mubr.msk.f32.vlgmr.msra.gmra.mxu0 %vm66_vm0, %v55_v2  ;;  %v193_v5 = vld [vmem:[%s1635_s7 + $0x18] sm:$0xff]  ;;  %v191_v7 = vld [vmem:[%s1635_s7 + $0x8] sm:$0xff]  ;;  %v190_v8 = vld [vmem:[%s1635_s7] sm:$0xff]  ;;  %vm1316_vm2 = vmmov 0   ;;  %vm334_vm3 = vcmask 130048   ;;  %v1317_v35 = vmov 0  }
   0xc   :  { %1164 = vmatprep.mubr.msk.f32.mxu0 %vm66_vm0, %v1426_v3  ;;  %1167 = vmatprep.subr.mxu1 %v193_v5  ;;  %v1109_v10 = vld [vmem:[%s1632_s4] ss:$0 sm:$0xff]  ;;  %v326_v34 = vld [vmem:[%s1639_s11 + $0x8] sm:$0xff]  ;;  %v433_v62 = vld [vmem:[%s1629_s1 + $0x10] sm:$0xff]  ;;  %v1318_v63 = vmov 1   ;;  %vm819_vm13 = vcmask 72704  }
   0xd   :  { %1168 = vmatpush3.msra.mxu1 %v193_v5  ;;  %v1114_v12 = vld [vmem:[%s1633_s5] ss:$0 sm:$0xff]  ;;  %1181 = vmatprep.subr.mxu0 %v326_v34  ;;  %vm844_vm14 = vcmask 1041409   ;;  %vm955_vm15 = vcmask 31744  }
   0xe   :  { %1169 = vmatprep.subr.mxu1 %v192_v6  ;;  %v1115_v16 = vld [vmem:[%s1634_s6] ss:$0 sm:$0xff]  ;;  %1225 = vset.pattern.permute.xlu0 %v1317_v35 }
   0xf   :  { %1165 = vmatmul.mubr.msk.f32.gmra.mxu0 %vm66_vm0, %v1434_v4  ;;  %1170 = vmatpush3.msra.mxu1 %v192_v6  ;;  %v432_v33 = vld [vmem:[%s1629_s1] sm:$0xff] }
  0x10   :  { %1171 = vmatprep.subr.mxu1 %v191_v7  ;;  %1182 = vmatpush3.msra.mxu0 %v326_v34  ;;  %v325_v36 = vld [vmem:[%s1639_s11] sm:$0xff] }
  0x11   :  { %1172 = vmatpush3.msra.mxu1 %v191_v7  ;;  %1183 = vmatprep.subr.mxu0 %v325_v36  ;;  %v1116_v37 = vld [vmem:[%s1636_s8] ss:$0 sm:$0xff] }
  0x12   :  { %1173 = vmatprep.subr.mxu1 %v190_v8  ;;  %1184 = vmatpush3.msra.mxu0 %v325_v36  ;;  %v1121_v39 = vld [vmem:[%s1637_s9] ss:$0 sm:$0xff] }
  0x13   :  { %1174 = vmatpush3.msra.mxu1 %v190_v8  ;;  %1198 = vmatprep.subr.mxu0 %v1315_v9  ;;  %v1122_v43 = vld [vmem:[%s1638_s10] ss:$0 sm:$0xff] }
  0x14   :  { %1191 = vmatprep.subr.mxu1 %v1315_v9  ;;  %1226 = vset.pattern.permute.xlu1 %v1318_v63 }
  0xcb   :  { %v1163_v11 = vpop.f32.mrf.mxu0 }
  0xcc   :  { %v151_v13 = vadd.f32 %v1163_v11, %v1109_v10 }
  0xcd   :  { %v145_v14 = vpop.f32.mrf.mxu0 }
  0xce   :  { %v172_v15 = vmul.f32 %v1114_v12, %v151_v13  ;;  %v146_v17 = vadd.f32 %v1109_v10, %v145_v14 }
  0xcf   :  { %v1166_v18 = vpop.f32.mrf.mxu0 }
  0xd0   :  { %v171_v19 = vmul.f32 %v1114_v12, %v146_v17  ;;  %v161_v20 = vadd.f32 %v1166_v18, %v1109_v10  ;;  %v183_v21 = vadd.f32 %v1115_v16, %v172_v15 }
  0xd1   :  { %v155_v22 = vpop.f32.mrf.mxu0 }
  0xd2   :  { %v174_v23 = vmul.f32 %v1114_v12, %v161_v20  ;;  %v156_v24 = vadd.f32 %v1109_v10, %v155_v22  ;;  %v182_v25 = vadd.f32 %v1115_v16, %v171_v19  ;;  %v187_v28 = vmax.f32 %v183_v21, 0.0 }
  0xd4   :  { %v173_v26 = vmul.f32 %v1114_v12, %v156_v24  ;;  %v186_v27 = vmax.f32 %v182_v25, 0.0  ;;  %v185_v29 = vadd.f32 %v1115_v16, %v174_v23 }
  0xd6   :  { %v184_v30 = vadd.f32 %v1115_v16, %v173_v26  ;;  %1175 = vmatprep.mubr.msk.f32.mxu1 %vm201_vm1, %v186_v27  ;;  %v189_v32 = vmax.f32 %v185_v29, 0.0  ;;  %v1319_v16 = vmov 2  }
  0xd7   :  { %1176 = vmatmul.mubr.msk.f32.vlgmr.msra.gmra.mxu1 %vm201_vm1, %v187_v28 }
  0xd8   :  { %v188_v31 = vmax.f32 %v184_v30, 0.0  ;;  %1192 = vmatpush3.msra.mxu1 %v55_v2 }
  0xd9   :  { %1193 = vmatprep.subr.mxu1 %v1315_v9 }
  0xda   :  { %1178 = vmatprep.mubr.msk.f32.mxu1 %vm201_vm1, %v188_v31  ;;  %1194 = vmatpush3.msra.mxu1 %v54_v1  ;;  %v580_v1 = vlaneseq }
  0xdb   :  { %1179 = vmatmul.mubr.msk.f32.gmra.mxu1 %vm201_vm1, %v189_v32  ;;  %1205 = vmatprep.subr.mxu1 %v1315_v9  ;;  %v1320_v32 = vmov 3   ;;  %vm994_vm1 = vcmask 123904  }
  0xdc   :  { %1195 = vmatprep.mubr.msk.f32.mxu1 %vm1316_vm2, %v1315_v9  ;;  %v1501_v2 = vshrl.u32 %v580_v1, 7 }
  0xde   :  { %vm608_vm4 = vcmp.eq.s32.totalorder %v1501_v2, 0  ;;  %v1519_v18 = vsub.s32 1, %v1501_v2  ;;  %vm637_vm5 = vcmp.eq.s32.totalorder %v1501_v2, 1  ;;  %vm666_vm6 = vcmp.eq.s32.totalorder %v1501_v2, 2 }
  0xdf   :  { %1196 = vmatmul.mubr.msk.f32.vlgmr.msra.gmra.mxu1 %vm334_vm3, %v432_v33  ;;  %vm695_vm7 = vcmp.eq.s32.totalorder %v1501_v2, 3  ;;  %vm724_vm8 = vcmp.eq.s32.totalorder %v1501_v2, 4  ;;  %vm753_vm9 = vcmp.eq.s32.totalorder %v1501_v2, 5  ;;  %vm782_vm10 = vcmp.eq.s32.totalorder %v1501_v2, 6 }
  0xe0   :  { %1207 = vmatprep.mubr.msk.f32.mxu1 %vm1316_vm2, %v1315_v9  ;;  %vm811_vm11 = vcmp.eq.s32.totalorder %v1501_v2, 7 }
 0x197   :  { %v1177_v38 = vpop.f32.mrf.mxu1 }
 0x198   :  { %v286_v40 = vadd.f32 %v1177_v38, %v1116_v37 }
 0x199   :  { %v280_v41 = vpop.f32.mrf.mxu1 }
 0x19a   :  { %v307_v42 = vmul.f32 %v1121_v39, %v286_v40  ;;  %v281_v44 = vadd.f32 %v1116_v37, %v280_v41 }
 0x19b   :  { %v1180_v45 = vpop.f32.mrf.mxu1 }
 0x19c   :  { %v306_v46 = vmul.f32 %v1121_v39, %v281_v44  ;;  %v296_v47 = vadd.f32 %v1180_v45, %v1116_v37  ;;  %v318_v48 = vadd.f32 %v1122_v43, %v307_v42 }
 0x19d   :  { %v290_v49 = vpop.f32.mrf.mxu1 }
 0x19e   :  { %v317_v50 = vadd.f32 %v1122_v43, %v306_v46  ;;  %v309_v51 = vmul.f32 %v1121_v39, %v296_v47  ;;  %v291_v52 = vadd.f32 %v1116_v37, %v290_v49  ;;  %v322_v56 = vmax.f32 %v318_v48, 0.0 }
 0x19f   :  { %v503_v53 = vpop.f32.mrf.mxu1  ;;  %v656_v37 = vsub.s32 2, %v1501_v2  ;;  %v1321_v49 = vmov 4  }
 0x1a0   :  { %v321_v54 = vmax.f32 %v317_v50, 0.0  ;;  %v308_v55 = vmul.f32 %v1121_v39, %v291_v52  ;;  %584 = vperm.xlu0 %1225, %v503_v53   ;;  %v320_v57 = vadd.f32 %v1122_v43, %v309_v51 }
 0x1a1   :  { %v1197_v58 = vpop.f32.mrf.mxu1 }
 0x1a2   :  { %v319_v59 = vadd.f32 %v1122_v43, %v308_v55  ;;  %1185 = vmatprep.mubr.msk.f32.mxu0 %vm334_vm3, %v321_v54  ;;  %v324_v61 = vmax.f32 %v320_v57, 0.0  ;;  %v685_v55 = vsub.s32 3, %v1501_v2 }
 0x1a3   :  { %1186 = vmatmul.mubr.msk.f32.vlgmr.msra.gmra.mxu0 %vm334_vm3, %v322_v56 }
 0x1a4   :  { %v323_v60 = vmax.f32 %v319_v59, 0.0  ;;  %1199 = vmatpush3.msra.mxu0 %v1434_v4 }
 0x1a5   :  { %1200 = vmatprep.subr.mxu0 %v1315_v9 }
 0x1a6   :  { %1188 = vmatprep.mubr.msk.f32.mxu0 %vm334_vm3, %v323_v60  ;;  %1201 = vmatpush3.msra.mxu0 %v1426_v3  ;;  %v1504_v3 = vsub.s32 0, %v1501_v2 }
 0x1a7   :  { %1189 = vmatmul.mubr.msk.f32.gmra.mxu0 %vm334_vm3, %v324_v61 }
 0x1a8   :  { %1202 = vmatprep.mubr.msk.f32.mxu0 %vm1316_vm2, %v1315_v9 }
 0x1ab   :  { %1203 = vmatmul.mubr.msk.f32.vlgmr.msra.gmra.mxu0 %vm334_vm3, %v433_v62 }
 0x21b   :  { %v585_v0 = vpop.permute.xlu0 %584 }
 0x21c   :  { %1239 = vrcp.f32 %v585_v0 }
 0x229   :  { %v1240_v4 = vpop.eup %1239 }
 0x22a   :  { %v593_v5 = vmul.f32 %v1240_v4, %v503_v53  ;;  %v1322_v4 = vmov 5  }
 0x22c   :  { %v599_v6 = vrot.slane %v593_v5, %v1504_v3 }
 0x22e   :  { %v604_v7 = vmul.f32 %v599_v6, %v585_v0 }
 0x230   :  { %v606_v8 = vsub.f32 %v503_v53, %v604_v7 }
 0x232   :  { %v609_v9 = vsel %vm608_vm4, %v599_v6, %v606_v8 }
 0x233   :  { %613 = vperm.xlu1 %1226, %v609_v9  }
 0x263   :  { %v1510_v10 = vpop.f32.mrf.mxu0 }
 0x265   :  { %v1512_v11 = vpop.f32.mrf.mxu0 }
 0x267   :  { %v1514_v12 = vpop.f32.mrf.mxu0 }
 0x269   :  { %v1516_v13 = vpop.f32.mrf.mxu0 }
 0x26b   :  { %v576_v14 = vpop.f32.mrf.mxu0 }
 0x26c   :  { %589 = vperm.xlu0 %1225, %v576_v14  }
 0x26d   :  { %v1204_v15 = vpop.f32.mrf.mxu0 }
 0x270   :  { %1227 = vset.pattern.permute.xlu0 %v1319_v16 }
 0x2ae   :  { %v614_v17 = vpop.permute.xlu1 %613 }
 0x2af   :  { %1241 = vrcp.f32 %v614_v17 }
 0x2bc   :  { %v1242_v19 = vpop.eup %1241 }
 0x2bd   :  { %v622_v20 = vmul.f32 %v1242_v19, %v609_v9 }
 0x2bf   :  { %v628_v21 = vrot.slane %v622_v20, %v1519_v18 }
 0x2c1   :  { %v633_v22 = vmul.f32 %v628_v21, %v614_v17 }
 0x2c3   :  { %v635_v23 = vsub.f32 %v609_v9, %v633_v22 }
 0x2c5   :  { %v638_v24 = vsel %vm637_vm5, %v628_v21, %v635_v23 }
 0x2c6   :  { %642 = vperm.xlu0 %1227, %v638_v24  }
 0x2ca   :  { %1230 = vset.pattern.permute.xlu0 %v1320_v32 }
 0x2e7   :  { %v590_v25 = vpop.permute.xlu0 %589 }
 0x2e8   :  { %1243 = vrcp.f32 %v590_v25 }
 0x2f5   :  { %v1244_v26 = vpop.eup %1243 }
 0x2f6   :  { %v595_v27 = vmul.f32 %v1244_v26, %v576_v14 }
 0x2f8   :  { %v603_v28 = vrot.slane %v595_v27, %v1504_v3 }
 0x2fa   :  { %v605_v29 = vmul.f32 %v603_v28, %v590_v25  ;;  %v1323_v25 = vmov 6  }
 0x2fc   :  { %v607_v30 = vsub.f32 %v576_v14, %v605_v29  ;;  %v714_v14 = vsub.s32 4, %v1501_v2 }
 0x2fe   :  { %v610_v31 = vsel %vm608_vm4, %v603_v28, %v607_v30 }
 0x2ff   :  { %618 = vperm.xlu1 %1226, %v610_v31  }
 0x303   :  { %1228 = vset.pattern.permute.xlu1 %v1319_v16 }
 0x341   :  { %v643_v33 = vpop.permute.xlu0 %642 }
 0x342   :  { %1245 = vrcp.f32 %v643_v33 }
 0x34f   :  { %v1246_v36 = vpop.eup %1245 }
 0x350   :  { %v651_v38 = vmul.f32 %v1246_v36, %v638_v24 }
 0x352   :  { %v657_v41 = vrot.slane %v651_v38, %v656_v37 }
 0x354   :  { %v662_v44 = vmul.f32 %v657_v41, %v643_v33 }
 0x356   :  { %v664_v47 = vsub.f32 %v638_v24, %v662_v44 }
 0x358   :  { %v667_v48 = vsel %vm666_vm6, %v657_v41, %v664_v47 }
 0x37a   :  { %v619_v34 = vpop.permute.xlu1 %618 }
 0x37b   :  { %1247 = vrcp.f32 %v619_v34 }
 0x388   :  { %v1248_v39 = vpop.eup %1247 }
 0x389   :  { %v624_v40 = vmul.f32 %v1248_v39, %v610_v31 }
 0x38b   :  { %v632_v42 = vrot.slane %v624_v40, %v1519_v18 }
 0x38d   :  { %v634_v43 = vmul.f32 %v632_v42, %v619_v34 }
 0x38f   :  { %v636_v45 = vsub.f32 %v610_v31, %v634_v43  ;;  %v743_v31 = vsub.s32 5, %v1501_v2 }
 0x391   :  { %v639_v46 = vsel %vm637_vm5, %v632_v42, %v636_v45  ;;  %v1324_v42 = vmov 7  }
 0x392   :  { %647 = vperm.xlu1 %1228, %v639_v46  }
 0x396   :  { %1229 = vset.pattern.permute.xlu1 %v1320_v32 }
 0x397   :  { %671 = vperm.xlu1 %1229, %v667_v48  }
 0x39b   :  { %1231 = vset.pattern.permute.xlu1 %v1321_v49 }
 0x40d   :  { %v648_v50 = vpop.permute.xlu1 %647 }
 0x40e   :  { %1249 = vrcp.f32 %v648_v50 }
 0x412   :  { %v672_v51 = vpop.permute.xlu1 %671 }
 0x413   :  { %1251 = vrcp.f32 %v672_v51 }
 0x41b   :  { %v1250_v52 = vpop.eup %1249 }
 0x41c   :  { %v653_v53 = vmul.f32 %v1250_v52, %v639_v46 }
 0x41e   :  { %v661_v54 = vrot.slane %v653_v53, %v656_v37 }
 0x420   :  { %v1252_v56 = vpop.eup %1251  ;;  %v663_v57 = vmul.f32 %v661_v54, %v648_v50 }
 0x421   :  { %v680_v58 = vmul.f32 %v1252_v56, %v667_v48 }
 0x422   :  { %v665_v59 = vsub.f32 %v639_v46, %v663_v57 }
 0x423   :  { %v686_v60 = vrot.slane %v680_v58, %v685_v55 }
 0x424   :  { %v668_v61 = vsel %vm666_vm6, %v661_v54, %v665_v59 }
 0x425   :  { %v691_v62 = vmul.f32 %v686_v60, %v672_v51  ;;  %676 = vperm.xlu0 %1230, %v668_v61  }
 0x427   :  { %v693_v63 = vsub.f32 %v667_v48, %v691_v62  ;;  %v772_v48 = vsub.s32 6, %v1501_v2 }
 0x429   :  { %v696_v0 = vsel %vm695_vm7, %v686_v60, %v693_v63  ;;  %1232 = vset.pattern.permute.xlu0 %v1322_v4  ;;  %v801_v63 = vsub.s32 7, %v1501_v2 }
 0x42a   :  { %700 = vperm.xlu1 %1231, %v696_v0  }
 0x4a0   :  { %v677_v5 = vpop.permute.xlu0 %676 }
 0x4a1   :  { %1253 = vrcp.f32 %v677_v5 }
 0x4a5   :  { %v701_v6 = vpop.permute.xlu1 %700 }
 0x4a6   :  { %1255 = vrcp.f32 %v701_v6 }
 0x4ae   :  { %v1254_v7 = vpop.eup %1253 }
 0x4af   :  { %v682_v8 = vmul.f32 %v1254_v7, %v668_v61 }
 0x4b1   :  { %v690_v9 = vrot.slane %v682_v8, %v685_v55  ;;  %v1562_v8 = vand.u32 127, %v580_v1 }
 0x4b3   :  { %v1256_v15 = vpop.eup %1255  ;;  %v692_v16 = vmul.f32 %v690_v9, %v677_v5  ;;  %vm816_vm12 = vcmp.eq.s32.totalorder %v1562_v8, 8 }
 0x4b4   :  { %v709_v17 = vmul.f32 %v1256_v15, %v696_v0 }
 0x4b5   :  { %v694_v19 = vsub.f32 %v668_v61, %v692_v16 }
 0x4b6   :  { %v715_v20 = vrot.slane %v709_v17, %v714_v14 }
 0x4b7   :  { %v697_v21 = vsel %vm695_vm7, %v690_v9, %v694_v19  ;;  %v826_v19 = vld [vmem:[%s1641_s13] sm:$0xff] }
 0x4b8   :  { %v720_v22 = vmul.f32 %v715_v20, %v701_v6  ;;  %705 = vperm.xlu1 %1231, %v697_v21   ;;  %1206 = vmatpush3.msra.mxu1 %v826_v19 }
 0x4ba   :  { %v722_v23 = vsub.f32 %v696_v0, %v720_v22 }
 0x4bc   :  { %v725_v24 = vsel %vm724_vm8, %v715_v20, %v722_v23  ;;  %1233 = vset.pattern.permute.xlu1 %v1322_v4 }
 0x4bd   :  { %729 = vperm.xlu0 %1232, %v725_v24  }
 0x4c1   :  { %1235 = vset.pattern.permute.xlu0 %v1323_v25 }
 0x533   :  { %v706_v26 = vpop.permute.xlu1 %705 }
 0x534   :  { %1257 = vrcp.f32 %v706_v26 }
 0x538   :  { %v730_v27 = vpop.permute.xlu0 %729 }
 0x539   :  { %1259 = vrcp.f32 %v730_v27 }
 0x541   :  { %v1258_v28 = vpop.eup %1257 }
 0x542   :  { %v711_v29 = vmul.f32 %v1258_v28, %v697_v21  ;;  %v996_v28 = vld [vmem:[%s1630_s2] sm:$0x3] }
 0x544   :  { %v719_v30 = vrot.slane %v711_v29, %v714_v14  ;;  %v1001_v29 = vrot.slane %v996_v28, %v1504_v3 }
 0x546   :  { %v1260_v32 = vpop.eup %1259  ;;  %v721_v33 = vmul.f32 %v719_v30, %v706_v26 }
 0x547   :  { %v738_v34 = vmul.f32 %v1260_v32, %v725_v24 }
 0x548   :  { %v723_v36 = vsub.f32 %v697_v21, %v721_v33 }
 0x549   :  { %v744_v37 = vrot.slane %v738_v34, %v743_v31 }
 0x54a   :  { %v726_v38 = vsel %vm724_vm8, %v719_v30, %v723_v36  ;;  %v1588_v30 = vsub.s32 %v1562_v8, %v1501_v2 }
 0x54b   :  { %v749_v39 = vmul.f32 %v744_v37, %v730_v27  ;;  %734 = vperm.xlu1 %1233, %v726_v38  }
 0x54d   :  { %v751_v40 = vsub.f32 %v725_v24, %v749_v39 }
 0x54f   :  { %1234 = vset.pattern.permute.xlu1 %v1323_v25  ;;  %v754_v41 = vsel %vm753_vm9, %v744_v37, %v751_v40  ;;  %v1325_v37 = vmov 1966171168   ;;  %v1130_v40 = vld [vmem:[%s1642_s14] ss:$0 sm:$0xff] }
 0x550   :  { %758 = vperm.xlu1 %1234, %v754_v41  }
 0x554   :  { %1236 = vset.pattern.permute.xlu1 %v1324_v42 }
 0x5c6   :  { %v735_v43 = vpop.permute.xlu1 %734 }
 0x5c7   :  { %1261 = vrcp.f32 %v735_v43 }
 0x5cb   :  { %v759_v44 = vpop.permute.xlu1 %758 }
 0x5cc   :  { %1263 = vrcp.f32 %v759_v44 }
 0x5d4   :  { %v1262_v45 = vpop.eup %1261 }
 0x5d5   :  { %v740_v46 = vmul.f32 %v1262_v45, %v726_v38 }
 0x5d7   :  { %v748_v47 = vrot.slane %v740_v46, %v743_v31 }
 0x5d9   :  { %v1264_v49 = vpop.eup %1263  ;;  %v750_v50 = vmul.f32 %v748_v47, %v735_v43 }
 0x5da   :  { %v767_v51 = vmul.f32 %v1264_v49, %v754_v41 }
 0x5db   :  { %v752_v52 = vsub.f32 %v726_v38, %v750_v50  ;;  %v920_v38 = vunpack.c.l.s4 %v1325_v37 }
 0x5dc   :  { %v773_v53 = vrot.slane %v767_v51, %v772_v48 }
 0x5dd   :  { %v755_v54 = vsel %vm753_vm9, %v748_v47, %v752_v52  ;;  %v921_v39 = vunpack.c.0.s8 %v920_v38 }
 0x5de   :  { %v778_v55 = vmul.f32 %v773_v53, %v759_v44  ;;  %763 = vperm.xlu0 %1235, %v755_v54  }
 0x5e0   :  { %v780_v56 = vsub.f32 %v754_v41, %v778_v55  ;;  %v924_v41 = vsub.s32 %v921_v39, %v1501_v2 }
 0x5e2   :  { %v783_v57 = vsel %vm782_vm10, %v773_v53, %v780_v56  ;;  %1237 = vset.pattern.permute.xlu0 %v1317_v35 }
 0x5e3   :  { %787 = vperm.xlu1 %1236, %v783_v57  }
 0x659   :  { %v764_v58 = vpop.permute.xlu0 %763 }
 0x65a   :  { %1265 = vrcp.f32 %v764_v58 }
 0x65e   :  { %v788_v59 = vpop.permute.xlu1 %787 }
 0x65f   :  { %1267 = vrcp.f32 %v788_v59 }
 0x667   :  { %v1266_v60 = vpop.eup %1265 }
 0x668   :  { %v769_v61 = vmul.f32 %v1266_v60, %v755_v54 }
 0x66a   :  { %v777_v62 = vrot.slane %v769_v61, %v772_v48  ;;  %v1123_v48 = vld [vmem:[%s1640_s12] ss:$0 sm:$0xff]  ;;  %s1326_s12 = smov [#allocation2]  }
 0x66b   :  { %v414_v49 = vadd.f32 %v1123_v48, %v1512_v11  ;;  %v419_v52 = vadd.f32 %v1510_v10, %v1123_v48  ;;  %v424_v53 = vadd.f32 %v1123_v48, %v1516_v13  ;;  %v1012_v10 = vrot.slane %v996_v28, %v1519_v18  ;;  %s1087_s14 = sshll.u32 %s1326_s12, 4  ;;  %s1088_s14 = int_to_ptr.vmem [resolvable:$true] %s1087_s14 }
 0x66c   :  { %v1268_v0 = vpop.eup %1267  ;;  %v779_v4 = vmul.f32 %v777_v62, %v764_v58  ;;  %s1271_s25 = scalar_lea.vmem %s1088_s14, 32  ;;  %p1276_p1 = scmp.lt.s32.totalorder %s1088_s14, %s1088_s14 }
 0x66d   :  { %v796_v5 = vmul.f32 %v1268_v0, %v783_v57  ;;  %p1272_p0 = scmp.ne.s32.totalorder %s1088_s14, %s1271_s25  ;;  %p1277_p2 = scmp.lt.s32.totalorder %s1271_s25, %s1271_s25 }
 0x66e   :  { %v781_v6 = vsub.f32 %v755_v54, %v779_v4 }
 0x66f   :  { %v802_v7 = vrot.slane %v796_v5, %v801_v63  ;;  %p1278_p3 = por %p1277_p2, %p1276_p1 }
 0x670   :  { %v784_v9 = vsel %vm782_vm10, %v777_v62, %v781_v6 }
 0x671   :  { %v807_v14 = vmul.f32 %v802_v7, %v788_v59  ;;  %792 = vperm.xlu1 %1236, %v784_v9   ;;  %v429_v59 = vadd.f32 %v1514_v12, %v1123_v48  ;;  %p1279_p4 = pnand %p1278_p3, %p1272_p0 }
 0x673   :  { %v809_v15 = vsub.f32 %v783_v57, %v807_v14 }
 0x675   :  { %v812_v16 = vsel %vm811_vm11, %v802_v7, %v809_v15  ;;  %1238 = vset.pattern.permute.xlu1 %v1317_v35 }
 0x676   :  { %v817_v1 = vsel %vm816_vm12, %v812_v16, 0.0 }
 0x677   :  { %v820_v17 = vsel %vm819_vm13, %v817_v1, 0.0 }
 0x678   :  { %821 = vadd.xlane.f32.xlu0 %v820_v17 }
 0x6ec   :  { %v793_v20 = vpop.permute.xlu1 %792 }
 0x6ed   :  { %1269 = vrcp.f32 %v793_v20 }
 0x6fa   :  { %v1270_v21 = vpop.eup %1269 }
 0x6fb   :  { %v798_v22 = vmul.f32 %v1270_v21, %v784_v9 }
 0x6fd   :  { %v806_v23 = vrot.slane %v798_v22, %v801_v63 }
 0x6ff   :  { %v808_v24 = vmul.f32 %v806_v23, %v793_v20 }
 0x701   :  { %v810_v25 = vsub.f32 %v784_v9, %v808_v24  ;;  %v822_v31 = vpop.xlane.xlu0 %821 }
 0x702   :  { %v839_v33 = vrot.slane %v822_v31, %v1588_v30 }
 0x703   :  { %v813_v35 = vsel %vm811_vm11, %v806_v23, %v810_v25 }
 0x704   :  { %v818_v26 = vsel %vm816_vm12, %v813_v35, 0.0 }
 0x705   :  { %v823_v27 = vsel %vm819_vm13, %v818_v26, 0.0 }
 0x706   :  { %824 = vadd.xlane.f32.xlu1 %v823_v27 }
 0x717   :  { %1003 = vbcast.lane.b32.xlu1 %v1001_v29, 256 }
 0x78f   :  { %v825_v32 = vpop.xlane.xlu1 %824 }
 0x790   :  { %v843_v34 = vrot.slane %v825_v32, %v1588_v30 }
 0x792   :  { %v845_v36 = vsel %vm844_vm14, %v843_v34, %v839_v33 }
 0x793   :  { %1208 = vmatmul.mubr.msk.f32.vlgmr.msra.gmra.mxu1 %vm66_vm0, %v845_v36  ;;  %v1004_v13 = vpop.permute.xlu1 %1003  ;;  %vm981_vm0 = vcmask 130112  }
 0x853   :  { %v914_v42 = vpop.f32.mrf.mxu1 }
 0x854   :  { %v915_v43 = vadd.f32 %v1130_v40, %v914_v42 }
 0x855   :  { %v1209_v44 = vpop.f32.mrf.mxu1 }
 0x856   :  { %v925_v45 = vrot.slane %v915_v43, %v924_v41 }
 0x858   :  { %v926_v46 = vcombine.high %v925_v45, %v925_v45  ;;  %v933_v47 = vrot.slane %v925_v45, %v924_v41 }
 0x85a   :  { %v944_v50 = vrot.slane %v933_v47, %v1504_v3  ;;  %v940_v51 = vrot.slane %v926_v46, %v924_v41 }
 0x85c   :  { %v951_v54 = vmul.f32 %v944_v50, %v414_v49  ;;  %v948_v55 = vrot.slane %v940_v51, %v1504_v3  ;;  %v952_v58 = vmul.f32 %v944_v50, %v419_v52  ;;  %v976_v3 = vadd.s32 4294967288, %v1562_v8 }
 0x85e   :  { %v956_v56 = vsel %vm955_vm15, %v951_v54, 0.0  ;;  %v953_v57 = vmul.f32 %v948_v55, %v424_v53  ;;  %v959_v11 = vsel %vm955_vm15, %v952_v58, 0.0  ;;  %v954_v61 = vmul.f32 %v948_v55, %v429_v59 }
 0x85f   :  { %957 = vadd.xlane.f32.xlu0 %v956_v56  ;;  %v979_v12 = vsub.s32 %v976_v3, %v1501_v2 }
 0x860   :  { %v962_v60 = vsel %vm955_vm15, %v953_v57, 0.0  ;;  %v965_v62 = vsel %vm955_vm15, %v954_v61, 0.0 }
 0x861   :  { %963 = vadd.xlane.f32.xlu1 %v962_v60 }
 0x863   :  { %960 = vadd.xlane.f32.xlu0 %v959_v11 }
 0x867   :  { %966 = vadd.xlane.f32.xlu0 %v965_v62 }
 0x872   :  { %1014 = vbcast.lane.b32.xlu1 %v1012_v10, 256 }
 0x876   :  { %1018 = vbcast.lane.b32.xlu1 %v1012_v10, 264 }
 0x87d   :  { %1007 = vbcast.lane.b32.xlu0 %v1001_v29, 264 }
 0x8e8   :  { %v958_v63 = vpop.xlane.xlu0 %957 }
 0x8e9   :  { %v1024_v0 = vsub.f32 %v958_v63, %v1004_v13  ;;  %v975_v18 = vrot.slane %v958_v63, %v1588_v30 }
 0x8ea   :  { %v964_v4 = vpop.xlane.xlu1 %963 }
 0x8eb   :  { %v1028_v5 = vmul.f32 %v1024_v0, %v1024_v0  ;;  %v986_v15 = vrot.slane %v964_v4, %v1588_v30 }
 0x8ec   :  { %v961_v6 = vpop.xlane.xlu0 %960 }
 0x8ed   :  { %1037 = vperm.xlu0 %1237, %v1028_v5   ;;  %v980_v9 = vrot.slane %v961_v6, %v979_v12 }
 0x8ee   :  { %v1015_v7 = vpop.permute.xlu1 %1014 }
 0x8ef   :  { %v982_v17 = vsel %vm981_vm0, %v980_v9, %v975_v18  ;;  %v1026_v23 = vsub.f32 %v964_v4, %v1015_v7 }
 0x8f0   :  { %v967_v14 = vpop.xlane.xlu0 %966 }
 0x8f1   :  { %v990_v16 = vrot.slane %v967_v14, %v979_v12  ;;  %v1030_v25 = vmul.f32 %v1026_v23, %v1026_v23 }
 0x8f2   :  { %v1019_v1 = vpop.permute.xlu1 %1018 }
 0x8f3   :  { %v1027_v8 = vsub.f32 %v967_v14, %v1019_v1  ;;  %v991_v19 = vsel %vm981_vm0, %v990_v16, %v986_v15 }
 0x8f4   :  { %v1008_v20 = vpop.permute.xlu0 %1007  ;;  %v992_v2 = vsel %vm844_vm14, %v991_v19, %v982_v17 }
 0x8f5   :  { %v1031_v21 = vmul.f32 %v1027_v8, %v1027_v8  ;;  %v1025_v22 = vsub.f32 %v961_v6, %v1008_v20  ;;  %995 = vst.msk [vmem:[#allocation2] sm:$0x3] %vm994_vm1, %v992_v2 }
 0x8f7   :  { %v1029_v24 = vmul.f32 %v1025_v22, %v1025_v22  ;;  %1046 = vperm.xlu0 %1237, %v1031_v21  }
 0x8f9   :  { %1040 = vperm.xlu1 %1238, %v1029_v24  }
 0x8fd   :  { %1043 = vperm.xlu1 %1238, %v1030_v25  }
 0x968   :  { %v1038_v35 = vpop.permute.xlu0 %1037 }
 0x969   :  { %v1051_v31 = vrot.slane %v1038_v35, %v1588_v30 }
 0x972   :  { %v1047_v27 = vpop.permute.xlu0 %1046 }
 0x973   :  { %v1064_v32 = vrot.slane %v1047_v27, %v979_v12 }
 0x974   :  { %v1041_v26 = vpop.permute.xlu1 %1040 }
 0x975   :  { %v1055_v28 = vrot.slane %v1041_v26, %v979_v12 }
 0x977   :  { %v1056_v34 = vsel %vm981_vm0, %v1055_v28, %v1051_v31 }
 0x978   :  { %v1044_v29 = vpop.permute.xlu1 %1043 }
 0x979   :  { %v1060_v33 = vrot.slane %v1044_v29, %v1588_v30 }
 0x97b   :  { %v1065_v36 = vsel %vm981_vm0, %v1064_v32, %v1060_v33 }
 0x97c   :  { %v1066_v37 = vsel %vm844_vm14, %v1065_v36, %v1056_v34 }
 0x97d   :  { %v1068_v38 = vsel %vm994_vm1, %v1066_v37, 0.0 }
 0x97e   :  { %1069 = vadd.xlane.f32.xlu1 %v1068_v38 }
 0x97f   :  { %1282 = shalt.err (!%p1279_p4)
}
 0x980   :  { %1090 = dma.vmem_to_hbm [thread:$0]  %s1088_s14, 32, %s1643_s15, [#allocation3]   ;;  %vm1079_vm2 = vcmask 0  }
 0x981   :  { %s1327_s28 = smov [#allocation4]  }
 0x982   :  { %s1097_s29 = sshll.u32 %s1327_s28, 4  ;;  %s1098_s29 = int_to_ptr.vmem [resolvable:$true] %s1097_s29 }
 0x983   :  { %s1291_s5 = scalar_lea.vmem %s1098_s29, 16  ;;  %s1295_s6 = scalar_lea.vmem %s1098_s29, 32 }
 0x984   :  { %p1292_p5 = scmp.ne.s32.totalorder %s1098_s29, %s1291_s5  ;;  %p1296_p6 = scmp.lt.s32.totalorder %s1098_s29, %s1098_s29 }
 0x985   :  { %p1297_p7 = scmp.lt.s32.totalorder %s1295_s6, %s1291_s5 }
 0x987   :  { %p1298_p8 = por %p1297_p7, %p1296_p6 }
 0x989   :  { %p1299_p9 = pnand %p1298_p8, %p1292_p5 }
 0xa07   :  { %v1070_v30 = vpop.xlane.xlu1 %1069 }
 0xa08   :  { %v1071_v39 = vrot.slane %v1070_v30, 4 }
 0xa0a   :  { %v1072_v40 = vadd.f32 %v1071_v39, %v1070_v30 }
 0xa0c   :  { %v1073_v41 = vrot.slane %v1072_v40, 2 }
 0xa0e   :  { %v1074_v42 = vadd.f32 %v1073_v41, %v1072_v40 }
 0xa10   :  { %v1075_v43 = vrot.slane %v1074_v42, 1 }
 0xa12   :  { %v1076_v44 = vadd.f32 %v1075_v43, %v1074_v42 }
 0xa14   :  { %1210 = vpush %v1076_v44 }
 0xa45   :  { %s1211_s4 = spop %1210 }
 0xa46   :  { %v1078_v45 = vstv %s1211_s4 }
 0xa47   :  { %1080 = vst.msk [vmem:[#allocation4] sm:$0x1] %vm1079_vm2, %v1078_v45 }
 0xa48   :  { %1302 = shalt.err (!%p1299_p9)
}
 0xa49   :  { %1100 = dma.vmem_to_hbm [thread:$0]  %s1098_s29, 16, %s1644_s16, [#allocation5]  }
 0xa4a   :  { %1311 = dma.done.wait [#allocation3], 32  }
 0xa4b   :  { %1312 = vsyncadd [#allocation3], 4294967264 }
 0xa4c   :  { %1313 = dma.done.wait [#allocation5], 16  }
 0xa4d   :  { %1314 = vsyncadd [#allocation5], 4294967280 }
 0xa4e   :  { %1107 = vsyncpa [#allocation3], 1 }
 0xa4f   :  { %1108 = vsyncpa [#allocation5], 1 }

</bundles_post_ra>
